<compile_context>
chip_gen: v7x
topology: tpu7x:2x2x1
jax: 0.10.0
libtpu: 0.0.40
codegen_flags: <defaults>
</compile_context>

<pallas_src>
import functools

import jax
import jax.numpy as jnp
from jax.experimental import pallas as pl
from jax.experimental.pallas import tpu as pltpu


def mlp_kernel(xT_ref, w1_ref, b1_ref, w2_ref, b2_ref, o_ref, *, use_bf16):
    xT = xT_ref[...]          # (10, TB)  batch on lanes
    w1 = w1_ref[...]          # (50, 10)  torch layout (out, in)
    w2 = w2_ref[...]          # (3, 50)
    if use_bf16:
        xT = xT.astype(jnp.bfloat16)
        w1 = w1.astype(jnp.bfloat16)
        w2 = w2.astype(jnp.bfloat16)

    # Layer 1: (50,10) @ (10,TB) -> (50,TB) on the MXU, f32 accumulation.
    h = jnp.dot(w1, xT, preferred_element_type=jnp.float32)
    h = jnp.maximum(h + b1_ref[...], 0.0)          # bias + ReLU in f32 (VPU)
    if use_bf16:
        h = h.astype(jnp.bfloat16)

    # Layer 2: (3,50) @ (50,TB) -> (3,TB), lane-dense output block.
    y = jnp.dot(w2, h, preferred_element_type=jnp.float32)
    o_ref[...] = (y + b2_ref[...]).astype(o_ref.dtype)


def _round_up(n, m):
    return -(-n // m) * m


def _choose_batch_tile(B, block_b):
    """Single full-extent block for small B; otherwise a multiple-of-256 tile
    with an even grid step count so v7x's two TensorCores stay balanced."""
    if B <= block_b:
        return B
    tb = block_b
    steps = pl.cdiv(B, tb)
    if steps % 2 == 1:
        cand = _round_up(pl.cdiv(B, steps + 1), 256)
        if 0 < cand <= block_b:
            tb = cand
    return tb


def neural_network_forward(x, w1, b1, w2, b2, *, block_b=2048):
    B, in_dim = x.shape
    out_dim = w2.shape[0]
    tb = _choose_batch_tile(B, block_b)
    # Only trade precision for MXU throughput when the tile is big enough for
    # the MXU to matter (large-batch path); B=100 stays full f32.
    use_bf16 = tb >= 1024
    grid = (pl.cdiv(B, tb),)

    xT = x.T  # (in_dim, B): batch onto the lane axis for the kernel

    yT = pl.pallas_call(
        functools.partial(mlp_kernel, use_bf16=use_bf16),
        out_shape=jax.ShapeDtypeStruct((out_dim, B), jnp.float32),
        grid=grid,
        in_specs=[
            # x tiled along batch (last axis); weights/biases use a constant
            # index_map so they stay VMEM-resident across grid steps.
            pl.BlockSpec((in_dim, tb), lambda i: (0, i)),
            pl.BlockSpec(w1.shape, lambda i: (0, 0)),
            pl.BlockSpec(b1.shape, lambda i: (0, 0)),
            pl.BlockSpec(w2.shape, lambda i: (0, 0)),
            pl.BlockSpec(b2.shape, lambda i: (0, 0)),
        ],
        out_specs=pl.BlockSpec((out_dim, tb), lambda i: (0, i)),
        compiler_params=pltpu.CompilerParams(
            # Batch tiles are independent -> shardable across TCs on v7x.
            dimension_semantics=("parallel",),
        ),
    )(xT, w1, b1, w2, b2)
    return yT.T  # back to torch's (B, out_dim)


def init_params(key):
    # Torch nn.Linear layouts: layer1 weight (50,10), bias (50,);
    # layer2 weight (3,50), bias (3,).  Biases stored as column vectors so
    # they broadcast against the (out, TB) activations inside the kernel.
    k1, k2, k3, k4 = jax.random.split(key, 4)
    bound1 = 1.0 / jnp.sqrt(10.0)
    bound2 = 1.0 / jnp.sqrt(50.0)
    w1 = jax.random.uniform(k1, (50, 10), jnp.float32, -bound1, bound1)
    b1 = jax.random.uniform(k2, (50, 1), jnp.float32, -bound1, bound1)
    w2 = jax.random.uniform(k3, (3, 50), jnp.float32, -bound2, bound2)
    b2 = jax.random.uniform(k4, (3, 1), jnp.float32, -bound2, bound2)
    return w1, b1, w2, b2


if __name__ == "__main__":
    key = jax.random.PRNGKey(0)
    kx, kp = jax.random.split(key)
    # Matches `x = torch.randn(100, 10)` from the reference script.
    x = jax.random.normal(kx, (100, 10), dtype=jnp.float32)
    w1, b1, w2, b2 = init_params(kp)

    out = neural_network_forward(x, w1, b1, w2, b2)
    out = jax.block_until_ready(out)

    # Plain-JAX f32 reference of the same forward pass (torch semantics:
    # y = relu(x @ W1^T + b1) @ W2^T + b2).  Full f32 at this size, so the
    # tolerance is tight again.
    ref = jnp.maximum(x @ w1.T + b1[:, 0], 0.0) @ w2.T + b2[:, 0]
    assert out.shape == (100, 3)
    assert jnp.allclose(out, ref, atol=1e-5, rtol=1e-5)

    print("KERNEL_OK")
</pallas_src>

<mosaic_0001>
module attributes {stable_mosaic.version = 11 : i64} {
  func.func @mlp_kernel(%arg0: i32, %arg1: memref<10x100xf32, #tpu.memory_space<vmem>>, %arg2: memref<50x10xf32, #tpu.memory_space<vmem>>, %arg3: memref<50x1xf32, #tpu.memory_space<vmem>>, %arg4: memref<3x50xf32, #tpu.memory_space<vmem>>, %arg5: memref<3x1xf32, #tpu.memory_space<vmem>>, %arg6: memref<3x100xf32, #tpu.memory_space<vmem>>) attributes {dimension_semantics = [#tpu.dimension_semantics<parallel>], iteration_bounds = array<i64: 1>, scalar_prefetch = 0 : i64, scratch_operands = 0 : i64, tpu.core_type = #tpu.core_type<tc>, window_params = [{transform_indices = @transform_0, window_bounds = array<i64: 10, 100>}, {pipeline_mode = #tpu.pipeline_mode<synchronous>, transform_indices = @transform_1, window_bounds = array<i64: 50, 10>}, {pipeline_mode = #tpu.pipeline_mode<synchronous>, transform_indices = @transform_2, window_bounds = array<i64: 50, 1>}, {pipeline_mode = #tpu.pipeline_mode<synchronous>, transform_indices = @transform_3, window_bounds = array<i64: 3, 50>}, {pipeline_mode = #tpu.pipeline_mode<synchronous>, transform_indices = @transform_4, window_bounds = array<i64: 3, 1>}, {transform_indices = @transform_5, window_bounds = array<i64: 3, 100>}]} {
    %c0 = arith.constant 0 : index
    %c0_0 = arith.constant 0 : index
    %0 = vector.load %arg1[%c0, %c0_0] : memref<10x100xf32, #tpu.memory_space<vmem>>, vector<10x100xf32>
    %c0_1 = arith.constant 0 : index
    %c0_2 = arith.constant 0 : index
    %1 = vector.load %arg2[%c0_1, %c0_2] : memref<50x10xf32, #tpu.memory_space<vmem>>, vector<50x10xf32>
    %c0_3 = arith.constant 0 : index
    %c0_4 = arith.constant 0 : index
    %2 = vector.load %arg4[%c0_3, %c0_4] : memref<3x50xf32, #tpu.memory_space<vmem>>, vector<3x50xf32>
    %cst = arith.constant dense<0.000000e+00> : vector<50x100xf32>
    %3 = tpu.matmul %1, %0, %cst {dimension_numbers = #tpu.dot_dimension_numbers<[1], [0], [0], [1], [0, 0, 1, 1], [], []>} : vector<50x10xf32>, vector<10x100xf32>, vector<50x100xf32> -> vector<50x100xf32>
    %c0_5 = arith.constant 0 : index
    %c0_6 = arith.constant 0 : index
    %4 = vector.load %arg3[%c0_5, %c0_6] : memref<50x1xf32, #tpu.memory_space<vmem>>, vector<50x1xf32>
    %5 = vector.broadcast %4 : vector<50x1xf32> to vector<50x100xf32>
    %6 = arith.addf %3, %5 : vector<50x100xf32>
    %cst_7 = arith.constant 0.000000e+00 : f32
    %7 = vector.broadcast %cst_7 : f32 to vector<50x100xf32>
    %8 = arith.maximumf %6, %7 : vector<50x100xf32>
    %cst_8 = arith.constant dense<0.000000e+00> : vector<3x100xf32>
    %9 = tpu.matmul %2, %8, %cst_8 {dimension_numbers = #tpu.dot_dimension_numbers<[1], [0], [0], [1], [0, 0, 1, 1], [], []>} : vector<3x50xf32>, vector<50x100xf32>, vector<3x100xf32> -> vector<3x100xf32>
    %c0_9 = arith.constant 0 : index
    %c0_10 = arith.constant 0 : index
    %10 = vector.load %arg5[%c0_9, %c0_10] : memref<3x1xf32, #tpu.memory_space<vmem>>, vector<3x1xf32>
    %11 = vector.broadcast %10 : vector<3x1xf32> to vector<3x100xf32>
    %12 = arith.addf %9, %11 : vector<3x100xf32>
    %c0_11 = arith.constant 0 : index
    %c0_12 = arith.constant 0 : index
    %13 = vector.load %arg6[%c0_11, %c0_12] : memref<3x100xf32, #tpu.memory_space<vmem>>, vector<3x100xf32>
    tpu.vector_store %arg6[%c0_11, %c0_12], %12 {strides = array<i32>} : memref<3x100xf32, #tpu.memory_space<vmem>>, vector<3x100xf32>,
    return
  }
  func.func @transform_0(%arg0: i32) -> (i32, i32) {
    %c0_i32 = arith.constant 0 : i32
    %c0_i32_0 = arith.constant 0 : i32
    return %c0_i32, %arg0 : i32, i32
  }
  func.func @transform_1(%arg0: i32) -> (i32, i32) {
    %c0_i32 = arith.constant 0 : i32
    %c0_i32_0 = arith.constant 0 : i32
    %c0_i32_1 = arith.constant 0 : i32
    return %c0_i32, %c0_i32_0 : i32, i32
  }
  func.func @transform_2(%arg0: i32) -> (i32, i32) {
    %c0_i32 = arith.constant 0 : i32
    %c0_i32_0 = arith.constant 0 : i32
    %c0_i32_1 = arith.constant 0 : i32
    return %c0_i32, %c0_i32_0 : i32, i32
  }
  func.func @transform_3(%arg0: i32) -> (i32, i32) {
    %c0_i32 = arith.constant 0 : i32
    %c0_i32_0 = arith.constant 0 : i32
    %c0_i32_1 = arith.constant 0 : i32
    return %c0_i32, %c0_i32_0 : i32, i32
  }
  func.func @transform_4(%arg0: i32) -> (i32, i32) {
    %c0_i32 = arith.constant 0 : i32
    %c0_i32_0 = arith.constant 0 : i32
    %c0_i32_1 = arith.constant 0 : i32
    return %c0_i32, %c0_i32_0 : i32, i32
  }
  func.func @transform_5(%arg0: i32) -> (i32, i32) {
    %c0_i32 = arith.constant 0 : i32
    %c0_i32_0 = arith.constant 0 : i32
    return %c0_i32, %arg0 : i32, i32
  }
}

</mosaic_0001>

<bundles_post_ra>
// kernel: tpu_custom_call.1
= control target key start
LH: loop header
LB: loop body
LE: loop exit
PB: predicated region body
PF: predicated region fallthrough
CT: control target
= control target key end

     0   :  { %vm95_vm0 = vcmask 1041408   ;;  %v419_v2 = vmov 0.0|0.0   ;;  %vm420_vm1 = vmmov 1   ;;  %vm421_vm3 = vmmov 0   ;;  %s551_s0 = inlined_call_operand.vmem [shape: f32[10,100], index: 0, kind: input, shape index: {}]   ;;  %s552_s1 = inlined_call_operand.vmem [shape: f32[50,10], index: 1, kind: input, shape index: {}]   ;;  %s553_s2 = inlined_call_operand.vmem [shape: f32[50,1], index: 2, kind: input, shape index: {}]   ;;  %s554_s3 = inlined_call_operand.vmem [shape: f32[3,50], index: 3, kind: input, shape index: {}]   ;;  %s555_s4 = inlined_call_operand.vmem [shape: f32[3,1], index: 4, kind: input, shape index: {}]   ;;  %s556_s5 = inlined_call_operand.hbm [shape: f32[3,100], index: 5, kind: output, shape index: {}]  }
   0x1   :  { %v21_v0 = vld [vmem:[%s551_s0] sm:$0xff]  ;;  %v22_v1 = vld [vmem:[%s551_s0 + $0x8] sm:$0x3]  ;;  %374 = vmatprep.subr.bf16.mxu0 %v419_v2  ;;  %vm376_vm2 = vmpackc.low %vm95_vm0, %vm420_vm1  ;;  %378 = vmatprep.subr.bf16.mxu1 %v419_v2  ;;  %v422_v4 = vmov 0.0   ;;  %vm73_vm4 = vcmask 80896   ;;  %v423_v6 = vmov 0  }
   0x2   :  { %v375_v3 = vpack.c.bf16 %v22_v1, %v21_v0  ;;  %336 = vmatprep.mubr.msk.f32.mxu0 %vm421_vm3, %v422_v4  ;;  %371 = vmatprep.mubr.msk.f32.mxu1 %vm421_vm3, %v422_v4  ;;  %v23_v5 = vld [vmem:[%s552_s1] sm:$0xff]  ;;  %v33_v8 = vld [vmem:[%s553_s2 + $0x10] sm:$0xff]  ;;  %v32_v9 = vld [vmem:[%s553_s2 + $0x8] sm:$0xff] }
   0x3   :  { %393 = vset.pattern.permute.xlu0 %v423_v6  ;;  %v31_v7 = vld [vmem:[%s553_s2] sm:$0xff]  ;;  %394 = vset.pattern.permute.xlu1 %v423_v6  ;;  %v34_v10 = vld [vmem:[%s553_s2 + $0x18] sm:$0xff] }
   0x4   :  { %377 = vmatpush3.bf16.msk.msra.mxu0 %vm376_vm2, %v375_v3  ;;  %40 = vperm.xlu0 %393, %v31_v7  }
   0x5   :  { %50 = vperm.xlu1 %394, %v33_v8  }
   0x7   :  { %337 = vmatmul.mubr.msk.f32.vlgmr.msra.gmra.mrb[0].mxu0 %vm73_vm4, %v23_v5 }
   0x8   :  { %10 = vsyncpa [#allocation3], 0  ;;  %339 = vmatprep.mubr.msk.f32.mxu0 %vm421_vm3, %v422_v4  ;;  %v24_v11 = vld [vmem:[%s552_s1 + $0x8] sm:$0xff]  ;;  %45 = vperm.xlu0 %393, %v32_v9   ;;  %v35_v12 = vld [vmem:[%s553_s2 + $0x20] sm:$0xff]  ;;  %vm212_vm5 = vcmask 408576   ;;  %s424_s24 = smov [#allocation2]  }
   0x9   :  { %55 = vperm.xlu1 %394, %v34_v10   ;;  %v36_v13 = vld [vmem:[%s553_s2 + $0x28] sm:$0xff]  ;;  %v25_v14 = vld [vmem:[%s552_s1 + $0x10] sm:$0xff]  ;;  %v206_v16 = vld [vmem:[%s555_s4] sm:$0x7]  ;;  %s297_s25 = sshll.u32 %s424_s24, 4  ;;  %vm289_vm6 = vcmask 813056   ;;  %s298_s25 = int_to_ptr.vmem [resolvable:$true] %s297_s25 }
   0xa   :  { %v37_v15 = vld [vmem:[%s553_s2 + $0x30] sm:$0x3]  ;;  %v26_v17 = vld [vmem:[%s552_s1 + $0x18] sm:$0xff]  ;;  %v27_v18 = vld [vmem:[%s552_s1 + $0x20] sm:$0xff]  ;;  %s395_s26 = scalar_lea.vmem %s298_s25, 64  ;;  %p400_p1 = scmp.lt.s32.totalorder %s298_s25, %s298_s25 }
   0xb   :  { %340 = vmatmul.mubr.msk.f32.gmra.mrb[2].mxu0 %vm73_vm4, %v24_v11  ;;  %v28_v19 = vld [vmem:[%s552_s1 + $0x28] sm:$0xff]  ;;  %v29_v20 = vld [vmem:[%s552_s1 + $0x30] sm:$0x3]  ;;  %v30_v59 = vld [vmem:[%s554_s3] sm:$0x7]  ;;  %p396_p0 = scmp.ne.s32.totalorder %s298_s25, %s395_s26  ;;  %p401_p2 = scmp.lt.s32.totalorder %s395_s26, %s395_s26 }
   0xc   :  { %342 = vmatprep.mubr.msk.f32.mxu0 %vm421_vm3, %v422_v4  ;;  %60 = vperm.xlu0 %393, %v35_v12  }
   0xd   :  { %65 = vperm.xlu1 %394, %v36_v13   ;;  %p402_p3 = por %p401_p2, %p400_p1 }
   0xf   :  { %343 = vmatmul.mubr.msk.f32.gmra.mrb[4].mxu0 %vm73_vm4, %v25_v14  ;;  %p403_p4 = pnand %p402_p3, %p396_p0 }
  0x10   :  { %345 = vmatprep.mubr.msk.f32.mxu0 %vm421_vm3, %v422_v4  ;;  %70 = vperm.xlu0 %393, %v37_v15  }
  0x11   :  { %209 = vperm.xlu1 %394, %v206_v16  }
  0x13   :  { %346 = vmatmul.mubr.msk.f32.gmra.mrb[6].mxu0 %vm73_vm4, %v26_v17 }
  0x14   :  { %348 = vmatprep.mubr.msk.f32.mxu0 %vm421_vm3, %v422_v4 }
  0x17   :  { %349 = vmatmul.mubr.msk.f32.gmra.mrb[8].mxu0 %vm73_vm4, %v27_v18 }
  0x18   :  { %351 = vmatprep.mubr.msk.f32.mxu0 %vm421_vm3, %v422_v4 }
  0x1b   :  { %352 = vmatmul.mubr.msk.f32.gmra.mrb[10].mxu0 %vm73_vm4, %v28_v19 }
  0x1c   :  { %354 = vmatprep.mubr.msk.f32.mxu0 %vm421_vm3, %v422_v4 }
  0x1f   :  { %355 = vmatmul.mubr.msk.f32.gmra.mrb[12].mxu0 %vm73_vm4, %v29_v20 }
  0x83   :  { %v41_v21 = vpop.permute.xlu0 %40 }
  0x84   :  { %v51_v29 = vpop.permute.xlu1 %50 }
  0x87   :  { %v46_v25 = vpop.permute.xlu0 %45 }
  0x88   :  { %v56_v36 = vpop.permute.xlu1 %55 }
  0x8b   :  { %v61_v45 = vpop.permute.xlu0 %60 }
  0x8c   :  { %v66_v47 = vpop.permute.xlu1 %65 }
  0x8f   :  { %v71_v53 = vpop.permute.xlu0 %70 }
  0x90   :  { %v210_v60 = vpop.permute.xlu1 %209 }
  0xda   :  { %v165_v22 = vpop.f32.mrb[0].mxu0 }
  0xdb   :  { %v338_v23 = vpop.f32.mrb[1].mxu0  ;;  %v166_v24 = vadd.f32 %v165_v22, %v41_v21 }
  0xdd   :  { %v199_v30 = vmax.f32 %v166_v24, 0.0 }
  0xde   :  { %v170_v26 = vpop.f32.mrb[2].mxu0 }
  0xdf   :  { %v171_v27 = vadd.f32 %v170_v26, %v46_v25  ;;  %v341_v28 = vpop.f32.mrb[3].mxu0 }
  0xe1   :  { %v200_v31 = vmax.f32 %v171_v27, 0.0 }
  0xe2   :  { %v175_v32 = vpop.f32.mrb[4].mxu0 }
  0xe3   :  { %v344_v33 = vpop.f32.mrb[5].mxu0  ;;  %v379_v34 = vpack.c.bf16 %v200_v31, %v199_v30  ;;  %v176_v35 = vadd.f32 %v175_v32, %v51_v29 }
  0xe5   :  { %380 = vmatpush3.bf16.msra.mxu1 %v379_v34  ;;  %v201_v40 = vmax.f32 %v176_v35, 0.0 }
  0xe6   :  { %v180_v37 = vpop.f32.mrb[6].mxu0  ;;  %381 = vmatprep.subr.bf16.mxu1 %v419_v2 }
  0xe7   :  { %v181_v38 = vadd.f32 %v180_v37, %v56_v36  ;;  %v347_v39 = vpop.f32.mrb[7].mxu0 }
  0xe9   :  { %v202_v41 = vmax.f32 %v181_v38, 0.0 }
  0xea   :  { %v185_v42 = vpop.f32.mrb[8].mxu0 }
  0xeb   :  { %v382_v43 = vpack.c.bf16 %v202_v41, %v201_v40  ;;  %v350_v44 = vpop.f32.mrb[9].mxu0  ;;  %v186_v46 = vadd.f32 %v185_v42, %v61_v45 }
  0xed   :  { %383 = vmatpush3.bf16.msra.mxu1 %v382_v43  ;;  %v203_v51 = vmax.f32 %v186_v46, 0.0 }
  0xee   :  { %v190_v48 = vpop.f32.mrb[10].mxu0  ;;  %384 = vmatprep.subr.bf16.mxu1 %v419_v2 }
  0xef   :  { %v191_v49 = vadd.f32 %v190_v48, %v66_v47  ;;  %v353_v50 = vpop.f32.mrb[11].mxu0 }
  0xf1   :  { %v204_v52 = vmax.f32 %v191_v49, 0.0 }
  0xf2   :  { %v195_v54 = vpop.f32.mrb[12].mxu0 }
  0xf3   :  { %v385_v55 = vpack.c.bf16 %v204_v52, %v203_v51  ;;  %v196_v56 = vadd.f32 %v195_v54, %v71_v53  ;;  %v356_v57 = vpop.f32.mrb[13].mxu0 }
  0xf5   :  { %386 = vmatpush3.bf16.msra.mxu1 %v385_v55  ;;  %v205_v58 = vmax.f32 %v196_v56, 0.0 }
  0xf6   :  { %369 = vmatprep.subr.mxu1 %v422_v4 }
  0xf9   :  { %370 = vmatpush3.msk.msra.mxu1 %vm95_vm0, %v205_v58 }
  0xfa   :  { %372 = vmatmul.mubr.msk.f32.vlgmr.msra.gmra.mrb[0].mxu1 %vm212_vm5, %v30_v59 }
 0x1cd   :  { %v285_v61 = vpop.f32.mrb[0].mxu1 }
 0x1ce   :  { %v286_v62 = vadd.f32 %v285_v61, %v210_v60  ;;  %v373_v63 = vpop.f32.mrb[1].mxu1 }
 0x1d0   :  { %290 = vst.msk [vmem:[#allocation2] sm:$0x7] %vm289_vm6, %v286_v62 }
 0x1d1   :  { %406 = shalt.err (!%p403_p4)
}
 0x1d2   :  { %s407_s28 = scalar_lea.hbm %s556_s5, 64 }
 0x1d3   :  { %p408_p5 = scmp.ne.s32.totalorder %s556_s5, %s407_s28  ;;  %p411_p6 = scmp.lt.u32.totalorder %s407_s28, %s556_s5 }
 0x1d5   :  { %p413_p7 = pnand %p411_p6, %p408_p5 }
 0x1d7   :  { %416 = shalt.err (!%p413_p7)
}
 0x1d8   :  { %300 = dma.vmem_to_hbm [thread:$0]  %s298_s25, 64, %s556_s5, [#allocation3]  }
 0x1d9   :  { %417 = dma.done.wait [#allocation3], 64  }
 0x1da   :  { %418 = vsyncadd [#allocation3], 4294967232 }
 0x1db   :  { %304 = vsyncpa [#allocation3], 1 }

</bundles_post_ra>
